<compile_context>
chip_gen: v6e
topology: v6e:2x2x1
jax: 0.10.0
libtpu: 0.0.40
codegen_flags: <defaults>
</compile_context>

<pallas_src>
import jax
import jax.numpy as jnp
from jax.experimental import pallas as pl
from jax.experimental.pallas import tpu as pltpu


_LANES = 128
_TILE_BYTES = 4 << 20          # target bytes per VMEM buffer (4 MiB)
_VMEM_LIMIT_BYTES = 32 << 20   # in+out, double-buffered (~4x tile) + headroom; safe on v5e/v6e/v7x
_MIN_GRID_STEPS = 8            # keep enough steps for 2-TC sharding + per-core pipelining


def _copy_kernel(x_ref, o_ref):
    # Identity on one lane-dense (TILE_R, 128) tile -- the whole "compute" of a view.
    o_ref[...] = x_ref[...]


def _resolve_view_shape(total, shape):
    """Resolve a torch-style view shape (single -1 supported, nested tuple supported)."""
    if len(shape) == 1 and isinstance(shape[0], (tuple, list)):
        shape = tuple(shape[0])
    shape = tuple(int(s) for s in shape)
    if -1 in shape:
        known = 1
        for s in shape:
            if s != -1:
                known *= s
        assert known != 0 and total % known == 0, "view shape incompatible with input size"
        shape = tuple(total // known if s == -1 else s for s in shape)
    prod = 1
    for s in shape:
        prod *= s
    assert prod == total, "view shape incompatible with input size"
    return shape


def _sublane_mult(dtype):
    """Minimal sublane extent for a dtype: 8 (32-bit), 16 (bf16/fp16), 32 (8-bit)."""
    itemsize = jnp.dtype(dtype).itemsize
    packing = max(1, 4 // itemsize)
    return 8 * packing


def _pallas_copy_rows(x2d):
    """Tiled, pipelined identity copy of a lane-dense (rows, 128) slab."""
    rows, lanes = x2d.shape                       # lanes == 128
    itemsize = jnp.dtype(x2d.dtype).itemsize
    sub = _sublane_mult(x2d.dtype)

    # Byte-sized tile: ~_TILE_BYTES per VMEM buffer, rounded to the sublane multiple.
    target_rows = max(sub, (_TILE_BYTES // (lanes * itemsize)) // sub * sub)
    tile_r = min(target_rows, rows)

    # For mid-size arrays keep >= _MIN_GRID_STEPS grid steps so the 'parallel'
    # axis can split across v7x's 2 TensorCores and still double-buffer per core.
    if rows >= _MIN_GRID_STEPS * sub:
        cap = max(sub, (rows // _MIN_GRID_STEPS) // sub * sub)
        tile_r = min(tile_r, cap)

    grid = (pl.cdiv(rows, tile_r),)

    return pl.pallas_call(
        _copy_kernel,
        out_shape=jax.ShapeDtypeStruct((rows, lanes), x2d.dtype),
        grid_spec=pl.GridSpec(
            grid=grid,
            in_specs=[pl.BlockSpec((tile_r, lanes), lambda i: (i, 0))],
            out_specs=pl.BlockSpec((tile_r, lanes), lambda i: (i, 0)),
        ),
        compiler_params=pltpu.CompilerParams(
            dimension_semantics=("parallel",),    # row tiles are independent
            vmem_limit_bytes=_VMEM_LIMIT_BYTES,   # cover 2x(in)+2x(out) large tiles
        ),
        cost_estimate=pl.CostEstimate(
            flops=0,
            transcendentals=0,
            bytes_accessed=2 * rows * lanes * itemsize,
        ),
    )(x2d)


class View:
    """JAX/Pallas equivalent of the PyTorch View module."""

    def __init__(self, shape):
        # Mirror the PyTorch module exactly: single int / -1 / tuple wrapped once.
        self.shape = (shape,)

    def __call__(self, x):
        total = int(x.size)
        target_shape = _resolve_view_shape(total, self.shape)

        flat = x.reshape(-1)                       # metadata-only reshape
        sub = _sublane_mult(x.dtype)
        chunk = _LANES * sub                       # elements per minimal (sublane, 128) tile
        aligned = (total // chunk) * chunk

        if aligned == 0:
            # Too small for even one lane-dense tile; the view is metadata-only.
            return flat.reshape(target_shape)

        prefix = flat if aligned == total else flat[:aligned]
        prefix2d = prefix.reshape(aligned // _LANES, _LANES)
        out_prefix = _pallas_copy_rows(prefix2d).reshape(-1)

        if aligned != total:
            # Tiny ragged tail (< chunk elements): append instead of pad+slice
            # full-array round trips.
            out_flat = jnp.concatenate([out_prefix, flat[aligned:]])
        else:
            out_flat = out_prefix

        return out_flat.reshape(target_shape)      # metadata-only reshape


if __name__ == "__main__":
    key = jax.random.PRNGKey(0)
    # NCHW input, small shapes: batch=2, channels=4, spatial=16x16
    x = jax.random.normal(key, (2, 4, 16, 16), dtype=jnp.float32)

    # View(-1): flatten, the most common usage.
    view = View(-1)
    y = jax.block_until_ready(view(x))
    expected = x.reshape(-1)
    assert y.shape == expected.shape and y.dtype == expected.dtype
    assert bool(jnp.all(y == expected))

    # Multi-dim view with -1 (torch: x.view(2, -1)).
    view2 = View((2, -1))
    y2 = jax.block_until_ready(view2(x))
    expected2 = x.reshape(2, -1)
    assert y2.shape == expected2.shape and bool(jnp.all(y2 == expected2))

    # Ragged size (1200 f32 elements = 1024 aligned + 176 tail) exercises the
    # aligned-prefix + concatenate path.
    x3 = jax.random.normal(jax.random.PRNGKey(0), (3, 400), dtype=jnp.float32)
    y3 = jax.block_until_ready(View((-1, 8))(x3))
    expected3 = x3.reshape(-1, 8)
    assert y3.shape == expected3.shape and bool(jnp.all(y3 == expected3))

    # bf16 (sublane packing factor 16) exercises dtype-aware tiling.
    x4 = jax.random.normal(jax.random.PRNGKey(0), (8, 512)).astype(jnp.bfloat16)
    y4 = jax.block_until_ready(View(-1)(x4))
    expected4 = x4.reshape(-1)
    assert y4.shape == expected4.shape and bool(jnp.all(y4 == expected4))

    print("KERNEL_OK")
</pallas_src>

<mosaic_0001>
module attributes {stable_mosaic.version = 11 : i64} {
  func.func @_copy_kernel(%arg0: i32, %arg1: memref<16x128xf32, #tpu.memory_space<vmem>>, %arg2: memref<16x128xf32, #tpu.memory_space<vmem>>) attributes {dimension_semantics = [#tpu.dimension_semantics<parallel>], iteration_bounds = array<i64: 1>, scalar_prefetch = 0 : i64, scratch_operands = 0 : i64, tpu.core_type = #tpu.core_type<tc>, window_params = [{transform_indices = @transform_0, window_bounds = array<i64: 16, 128>}, {transform_indices = @transform_1, window_bounds = array<i64: 16, 128>}]} {
    %c0 = arith.constant 0 : index
    %c0_0 = arith.constant 0 : index
    %0 = vector.load %arg1[%c0, %c0_0] : memref<16x128xf32, #tpu.memory_space<vmem>>, vector<16x128xf32>
    %c0_1 = arith.constant 0 : index
    %c0_2 = arith.constant 0 : index
    %1 = vector.load %arg2[%c0_1, %c0_2] : memref<16x128xf32, #tpu.memory_space<vmem>>, vector<16x128xf32>
    tpu.vector_store %arg2[%c0_1, %c0_2], %0 {strides = array<i32>} : memref<16x128xf32, #tpu.memory_space<vmem>>, vector<16x128xf32>,
    return
  }
  func.func @transform_0(%arg0: i32) -> (i32, i32) {
    %c0_i32 = arith.constant 0 : i32
    %c0_i32_0 = arith.constant 0 : i32
    return %arg0, %c0_i32 : i32, i32
  }
  func.func @transform_1(%arg0: i32) -> (i32, i32) {
    %c0_i32 = arith.constant 0 : i32
    %c0_i32_0 = arith.constant 0 : i32
    return %arg0, %c0_i32 : i32, i32
  }
}

</mosaic_0001>

<bundles_post_ra>
// kernel: tpu_custom_call.1
= control target key start
LH: loop header
LB: loop body
LE: loop exit
PB: predicated region body
PF: predicated region fallthrough
CT: control target
= control target key end

     0   :  { %6 = vsyncpa [#allocation3], 0  ;;  %s112_s0 = inlined_call_operand.hbm [shape: f32[16,128], index: 0, kind: input, shape index: {}]   ;;  %s113_s1 = inlined_call_operand.hbm [shape: f32[16,128], index: 1, kind: output, shape index: {}]  }
   0x1   :  { %7 = vsyncpa [#allocation4], 0  ;;  %s92_s6 = smov [#allocation2]  }
   0x2   :  { %s13_s7 = sshll.u32 %s92_s6, 4  ;;  %s14_s7 = int_to_ptr.vmem [resolvable:$true] %s13_s7 }
   0x3   :  { %s56_s8 = scalar_lea.vmem %s14_s7, 256  ;;  %p61_p1 = scmp.lt.s32.totalorder %s14_s7, %s14_s7 }
   0x4   :  { %p57_p0 = scmp.ne.s32.totalorder %s14_s7, %s56_s8  ;;  %p62_p2 = scmp.lt.s32.totalorder %s56_s8, %s56_s8 }
   0x6   :  { %p63_p3 = por %p62_p2, %p61_p1 }
   0x8   :  { %p64_p4 = pnand %p63_p3, %p57_p0 }
   0xa   :  { %67 = shalt.err (!%p64_p4)
}
   0xb   :  { %s93_s9 = smov 128   ;;  %s94_s10 = smov 8  }
   0xc   :  { %19 = dma.hbm_to_vmem [thread:$0]  %s112_s0, 256, %s14_s7, [#allocation3], %s93_s9, %s93_s9, %s94_s10  }
   0xd   :  { %88 = dma.done.wait [#allocation3], 256  }
   0xe   :  { %89 = vsyncadd [#allocation3], 4294967040  ;;  %s95_s13 = smov [#allocation5]   ;;  %v23_v0 = vld [vmem:[#allocation2] sm:$0xff]  ;;  %v24_v1 = vld [vmem:[#allocation2 + $0x8] sm:$0xff] }
   0xf   :  { %s32_s14 = sshll.u32 %s95_s13, 4  ;;  %25 = vst [vmem:[#allocation5] sm:$0xff] %v23_v0  ;;  %26 = vst [vmem:[#allocation5 + $0x8] sm:$0xff] %v24_v1  ;;  %s33_s14 = int_to_ptr.vmem [resolvable:$true] %s32_s14 }
  0x10   :  { %s68_s15 = scalar_lea.vmem %s33_s14, 256  ;;  %p73_p6 = scmp.lt.s32.totalorder %s33_s14, %s33_s14 }
  0x11   :  { %p69_p5 = scmp.ne.s32.totalorder %s33_s14, %s68_s15  ;;  %p74_p7 = scmp.lt.s32.totalorder %s68_s15, %s68_s15 }
  0x13   :  { %p75_p8 = por %p74_p7, %p73_p6 }
  0x15   :  { %p76_p9 = pnand %p75_p8, %p69_p5 }
  0x17   :  { %79 = shalt.err (!%p76_p9)
}
  0x18   :  { %38 = dma.vmem_to_hbm [thread:$0]  %s33_s14, 256, %s113_s1, [#allocation4], %s93_s9, %s93_s9, %s94_s10  }
  0x19   :  { %90 = dma.done.wait [#allocation4], 256  }
  0x1a   :  { %91 = vsyncadd [#allocation4], 4294967040 }
  0x1b   :  { %42 = vsyncpa [#allocation3], 1 }
  0x1c   :  { %43 = vsyncpa [#allocation4], 1 }

</bundles_post_ra>
